<compile_context>
chip_gen: v7x
topology: tpu7x:2x2x1
jax: 0.10.0
libtpu: 0.0.40
codegen_flags: <defaults>
</compile_context>

<pallas_src>
import functools

import jax
import jax.numpy as jnp
from jax.experimental import pallas as pl
from jax.experimental.pallas import tpu as pltpu

NEG_SLOPE = 0.01                       # torch.nn.LeakyReLU default
_LANE = 128
_TARGET_STEP_BYTES = 2 * 1024 * 1024   # target HBM traffic per grid step
_WEIGHT_SINGLE_BUFFER_BYTES = 2 * 1024 * 1024  # single-buffer weights above this


def _leaky_relu(x):
    return jnp.where(x > 0, x, NEG_SLOPE * x)


def conv1x1_mlp_kernel(x_ref, w1_ref, b1_ref, w2_ref, b2_ref, w3_ref, b3_ref,
                       o_ref):
    """x_ref: (1, C_in, TL) native dtype; wK: (outK, inK) compute dtype;
    bK: (outK, 1) f32; o_ref: (1, out_f, TL)."""
    cd = w1_ref.dtype                                   # compute dtype (bf16)
    x = x_ref[0].astype(cd)                             # in-kernel cast (free under DMA)
    h = jnp.dot(w1_ref[...], x, preferred_element_type=jnp.float32)
    h = _leaky_relu(h + b1_ref[...]).astype(cd)         # (hidden, TL)
    h = jnp.dot(w2_ref[...], h, preferred_element_type=jnp.float32)
    h = _leaky_relu(h + b2_ref[...]).astype(cd)         # (hidden, TL)
    o = jnp.dot(w3_ref[...], h, preferred_element_type=jnp.float32)
    o_ref[0] = (o + b3_ref[...]).astype(o_ref.dtype)    # (out_f, TL)


def _cdiv(a, b):
    return (a + b - 1) // b


def _round_down_lane(n):
    return max(_LANE, (n // _LANE) * _LANE)


def _vmem_capacity_bytes():
    """Generation-aware VMEM capacity; conservative fallback = v7x (64 MiB)."""
    try:
        info = pltpu.get_tpu_info()
        cap = getattr(info, "vmem_capacity_bytes", None)
        if cap:
            return int(cap)
    except Exception:
        pass
    return 64 * 1024 * 1024


def _plan_tiles(N, L, C_in, hidden, out_f, x_itemsize, out_itemsize,
                compute_itemsize, weight_buf_bytes):
    """Pick (tile_l, vmem_limit_bytes) for the spatial/lane axis."""
    vmem_cap = _vmem_capacity_bytes()
    # v7x (64 MiB) -> 48 MiB scoped limit; v5e/v6e (128 MiB) -> 96 MiB.
    vmem_limit = max(min((vmem_cap * 3) // 4, 96 * 1024 * 1024),
                     16 * 1024 * 1024)

    # Per-lane VMEM bytes: double-buffered x tile (native dtype), double-
    # buffered out tile, ~2 live (hidden, tile_l) f32 intermediates plus
    # compute-dtype copies of x / h.
    per_lane_vmem = (2 * C_in * x_itemsize + 2 * out_f * out_itemsize
                     + 2 * hidden * 4 + hidden * compute_itemsize
                     + C_in * compute_itemsize)
    budget = max(vmem_limit - weight_buf_bytes - 2 * 1024 * 1024,
                 4 * 1024 * 1024)

    # HBM traffic per lane per step: read x, write out.
    per_lane_io = C_in * x_itemsize + out_f * out_itemsize

    tile_l = min(_TARGET_STEP_BYTES // per_lane_io, budget // per_lane_vmem)
    tile_l = _round_down_lane(int(tile_l))

    if L % _LANE == 0:
        tile_l = min(tile_l, L)
    elif L <= tile_l:
        tile_l = L                             # full-extent block (legal even if unaligned)
    else:
        tile_l = min(tile_l, _round_down_lane(L))   # clipped partial last block, no jnp.pad

    # v7x megacore: prefer an even total step count so both TensorCores get
    # equal work; never shrink the tile below half its chosen size.
    steps = N * _cdiv(L, tile_l)
    if steps % 2 != 0 and tile_l > _LANE and tile_l % _LANE == 0:
        t = tile_l - _LANE
        while t >= max(_LANE, tile_l // 2):
            if (N * _cdiv(L, t)) % 2 == 0:
                tile_l = t
                break
            t -= _LANE

    return tile_l, vmem_limit


@functools.partial(
    jax.jit,
    static_argnames=("tile_l", "vmem_limit_bytes", "compute_dtype",
                     "out_dtype", "single_buffer_weights"))
def _conv2d1x1_pallas(x_nchw, w1, b1, w2, b2, w3, b3, *, tile_l,
                      vmem_limit_bytes, compute_dtype, out_dtype,
                      single_buffer_weights):
    N, C_in, H, W = x_nchw.shape
    hidden = w1.shape[0]
    out_f = w3.shape[0]
    L = H * W

    # Free reshape (no transpose, NO dtype cast): spatial axis -> lanes.
    x3d = x_nchw.reshape(N, C_in, L)

    w1c = w1.astype(compute_dtype)
    w2c = w2.astype(compute_dtype)
    w3c = w3.astype(compute_dtype)
    # Bias + activation math stays in f32 (exact on v5e too).
    b1c = b1.astype(jnp.float32).reshape(hidden, 1)
    b2c = b2.astype(jnp.float32).reshape(hidden, 1)
    b3c = b3.astype(jnp.float32).reshape(out_f, 1)

    grid = (N, _cdiv(L, tile_l))

    if single_buffer_weights:
        # Constant index map -> fetched once; no point double-buffering them.
        const = lambda shape: pl.BlockSpec(shape, lambda n, l: (0, 0),
                                           pipeline_mode=pl.Buffered(1))
    else:
        const = lambda shape: pl.BlockSpec(shape, lambda n, l: (0, 0))

    flops = 2 * N * L * (C_in * hidden + hidden * hidden + hidden * out_f)
    weight_bytes = ((hidden * C_in + hidden * hidden + out_f * hidden)
                    * jnp.dtype(compute_dtype).itemsize
                    + (2 * hidden + out_f) * 4)
    bytes_accessed = (N * L * (C_in * x_nchw.dtype.itemsize
                               + out_f * jnp.dtype(out_dtype).itemsize)
                      + weight_bytes)

    out3d = pl.pallas_call(
        conv1x1_mlp_kernel,
        out_shape=jax.ShapeDtypeStruct((N, out_f, L), out_dtype),
        grid_spec=pltpu.PrefetchScalarGridSpec(
            num_scalar_prefetch=0,
            grid=grid,
            in_specs=[
                pl.BlockSpec((1, C_in, tile_l), lambda n, l: (n, 0, l)),  # x
                const((hidden, C_in)),    # W1
                const((hidden, 1)),       # b1
                const((hidden, hidden)),  # W2
                const((hidden, 1)),       # b2
                const((out_f, hidden)),   # W3
                const((out_f, 1)),        # b3
            ],
            out_specs=pl.BlockSpec((1, out_f, tile_l), lambda n, l: (n, 0, l)),
        ),
        compiler_params=pltpu.CompilerParams(
            dimension_semantics=("parallel", "parallel"),
            vmem_limit_bytes=vmem_limit_bytes,
        ),
        cost_estimate=pl.CostEstimate(flops=flops, transcendentals=0,
                                      bytes_accessed=bytes_accessed),
    )(x3d, w1c, b1c, w2c, b2c, w3c, b3c)

    return out3d.reshape(N, out_f, H, W)


def conv2d1x1_forward(x_nchw, w1, b1, w2, b2, w3, b3, *,
                      compute_dtype=jnp.bfloat16, out_dtype=None):
    """x_nchw: (N, C_in, H, W). Weights wK: (outK, inK) (PyTorch 1x1 conv layout
    with the kernel dims squeezed); biases bK: (outK,). Set out_dtype=bf16 to
    halve the output HBM stream when the caller can accept it."""
    N, C_in, H, W = x_nchw.shape
    hidden = w1.shape[0]
    out_f = w3.shape[0]
    L = H * W

    if out_dtype is None:
        out_dtype = x_nchw.dtype            # preserve nn.Module semantics by default
    out_dtype = jnp.dtype(out_dtype)
    compute_dtype = jnp.dtype(compute_dtype)

    x_itemsize = jnp.dtype(x_nchw.dtype).itemsize
    out_itemsize = out_dtype.itemsize
    compute_itemsize = compute_dtype.itemsize

    weight_bytes = ((hidden * C_in + hidden * hidden + out_f * hidden)
                    * compute_itemsize + (2 * hidden + out_f) * 4)
    single_buffer_weights = weight_bytes > _WEIGHT_SINGLE_BUFFER_BYTES
    weight_buf_bytes = weight_bytes * (1 if single_buffer_weights else 2)

    tile_l, vmem_limit = _plan_tiles(N, L, C_in, hidden, out_f, x_itemsize,
                                     out_itemsize, compute_itemsize,
                                     weight_buf_bytes)

    return _conv2d1x1_pallas(
        x_nchw, w1, b1, w2, b2, w3, b3,
        tile_l=tile_l, vmem_limit_bytes=vmem_limit,
        compute_dtype=compute_dtype, out_dtype=out_dtype,
        single_buffer_weights=single_buffer_weights)


def init_params(key, in_f, hidden_dim, out_f, dtype=jnp.float32):
    """Deterministic PyTorch-style Conv2d init; weights stored as (out, in)."""
    ks = jax.random.split(key, 6)

    def uniform(k, shape, fan_in):
        bound = 1.0 / jnp.sqrt(fan_in)
        return jax.random.uniform(k, shape, dtype, -bound, bound)

    w1 = uniform(ks[0], (hidden_dim, in_f), in_f)
    b1 = uniform(ks[1], (hidden_dim,), in_f)
    w2 = uniform(ks[2], (hidden_dim, hidden_dim), hidden_dim)
    b2 = uniform(ks[3], (hidden_dim,), hidden_dim)
    w3 = uniform(ks[4], (out_f, hidden_dim), hidden_dim)
    b3 = uniform(ks[5], (out_f,), hidden_dim)
    return w1, b1, w2, b2, w3, b3


def reference_forward(x_nchw, w1, b1, w2, b2, w3, b3,
                      compute_dtype=jnp.bfloat16):
    """Plain-JAX reference mirroring the kernel's mixed-precision recipe
    (bf16 MXU operands, f32 accumulation / bias / LeakyReLU)."""
    N, C, H, W = x_nchw.shape
    x = x_nchw.reshape(N, C, H * W).astype(compute_dtype)

    def layer(x_cd, w, b):
        y = jnp.einsum('oc,ncl->nol', w.astype(compute_dtype), x_cd,
                       preferred_element_type=jnp.float32)
        return y + b.astype(jnp.float32)[None, :, None]

    h = jax.nn.leaky_relu(layer(x, w1, b1), NEG_SLOPE).astype(compute_dtype)
    h = jax.nn.leaky_relu(layer(h, w2, b2), NEG_SLOPE).astype(compute_dtype)
    out = layer(h, w3, b3)
    return out.astype(x_nchw.dtype).reshape(N, -1, H, W)


if __name__ == "__main__":
    key = jax.random.PRNGKey(0)
    k_x, k_p = jax.random.split(key)

    N, in_f, H, W = 2, 4, 16, 16
    hidden_dim, out_f = 32, 4

    x = jax.random.normal(k_x, (N, in_f, H, W), jnp.float32)
    params = init_params(k_p, in_f, hidden_dim, out_f)

    out = conv2d1x1_forward(x, *params)
    out = jax.block_until_ready(out)

    ref = reference_forward(x, *params)
    assert out.shape == (N, out_f, H, W), out.shape
    max_err = float(jnp.max(jnp.abs(out - ref)))
    assert max_err < 1e-3, max_err

    print("KERNEL_OK")
</pallas_src>

<mosaic_0001>
module attributes {stable_mosaic.version = 11 : i64} {
  func.func @conv1x1_mlp_kernel(%arg0: i32, %arg1: i32, %arg2: memref<1x4x256xf32, #tpu.memory_space<vmem>>, %arg3: memref<32x4xbf16, #tpu.memory_space<vmem>>, %arg4: memref<32x1xf32, #tpu.memory_space<vmem>>, %arg5: memref<32x32xbf16, #tpu.memory_space<vmem>>, %arg6: memref<32x1xf32, #tpu.memory_space<vmem>>, %arg7: memref<4x32xbf16, #tpu.memory_space<vmem>>, %arg8: memref<4x1xf32, #tpu.memory_space<vmem>>, %arg9: memref<1x4x256xf32, #tpu.memory_space<vmem>>) attributes {dimension_semantics = [#tpu.dimension_semantics<parallel>, #tpu.dimension_semantics<parallel>], iteration_bounds = array<i64: 2, 1>, scalar_prefetch = 0 : i64, scratch_operands = 0 : i64, tpu.core_type = #tpu.core_type<tc>, window_params = [{transform_indices = @transform_0, window_bounds = array<i64: 1, 4, 256>}, {pipeline_mode = #tpu.pipeline_mode<synchronous>, transform_indices = @transform_1, window_bounds = array<i64: 32, 4>}, {pipeline_mode = #tpu.pipeline_mode<synchronous>, transform_indices = @transform_2, window_bounds = array<i64: 32, 1>}, {pipeline_mode = #tpu.pipeline_mode<synchronous>, transform_indices = @transform_3, window_bounds = array<i64: 32, 32>}, {pipeline_mode = #tpu.pipeline_mode<synchronous>, transform_indices = @transform_4, window_bounds = array<i64: 32, 1>}, {pipeline_mode = #tpu.pipeline_mode<synchronous>, transform_indices = @transform_5, window_bounds = array<i64: 4, 32>}, {pipeline_mode = #tpu.pipeline_mode<synchronous>, transform_indices = @transform_6, window_bounds = array<i64: 4, 1>}, {transform_indices = @transform_7, window_bounds = array<i64: 1, 4, 256>}]} {
    %c0 = arith.constant 0 : index
    %c0_0 = arith.constant 0 : index
    %c0_1 = arith.constant 0 : index
    %0 = vector.load %arg2[%c0, %c0_0, %c0_1] : memref<1x4x256xf32, #tpu.memory_space<vmem>>, vector<1x4x256xf32>
    %1 = vector.shape_cast %0 : vector<1x4x256xf32> to vector<4x256xf32>
    %2 = arith.truncf %1 : vector<4x256xf32> to vector<4x256xbf16>
    %c0_2 = arith.constant 0 : index
    %c0_3 = arith.constant 0 : index
    %3 = vector.load %arg3[%c0_2, %c0_3] : memref<32x4xbf16, #tpu.memory_space<vmem>>, vector<32x4xbf16>
    %cst = arith.constant dense<0.000000e+00> : vector<32x256xf32>
    %4 = tpu.matmul %3, %2, %cst {dimension_numbers = #tpu.dot_dimension_numbers<[1], [0], [0], [1], [0, 0, 1, 1], [], []>} : vector<32x4xbf16>, vector<4x256xbf16>, vector<32x256xf32> -> vector<32x256xf32>
    %c0_4 = arith.constant 0 : index
    %c0_5 = arith.constant 0 : index
    %5 = vector.load %arg4[%c0_4, %c0_5] : memref<32x1xf32, #tpu.memory_space<vmem>>, vector<32x1xf32>
    %6 = vector.broadcast %5 : vector<32x1xf32> to vector<32x256xf32>
    %7 = arith.addf %4, %6 : vector<32x256xf32>
    %cst_6 = arith.constant 0.000000e+00 : f32
    %8 = vector.broadcast %cst_6 : f32 to vector<32x256xf32>
    %9 = arith.cmpf ogt, %7, %8 : vector<32x256xf32>
    %cst_7 = arith.constant 0.00999999977 : f32
    %10 = vector.broadcast %cst_7 : f32 to vector<32x256xf32>
    %11 = arith.mulf %10, %7 : vector<32x256xf32>
    %12 = arith.select %9, %7, %11 : vector<32x256xi1>, vector<32x256xf32>
    %13 = arith.truncf %12 : vector<32x256xf32> to vector<32x256xbf16>
    %c0_8 = arith.constant 0 : index
    %c0_9 = arith.constant 0 : index
    %14 = vector.load %arg5[%c0_8, %c0_9] : memref<32x32xbf16, #tpu.memory_space<vmem>>, vector<32x32xbf16>
    %cst_10 = arith.constant dense<0.000000e+00> : vector<32x256xf32>
    %15 = tpu.matmul %14, %13, %cst_10 {dimension_numbers = #tpu.dot_dimension_numbers<[1], [0], [0], [1], [0, 0, 1, 1], [], []>} : vector<32x32xbf16>, vector<32x256xbf16>, vector<32x256xf32> -> vector<32x256xf32>
    %c0_11 = arith.constant 0 : index
    %c0_12 = arith.constant 0 : index
    %16 = vector.load %arg6[%c0_11, %c0_12] : memref<32x1xf32, #tpu.memory_space<vmem>>, vector<32x1xf32>
    %17 = vector.broadcast %16 : vector<32x1xf32> to vector<32x256xf32>
    %18 = arith.addf %15, %17 : vector<32x256xf32>
    %cst_13 = arith.constant 0.000000e+00 : f32
    %19 = vector.broadcast %cst_13 : f32 to vector<32x256xf32>
    %20 = arith.cmpf ogt, %18, %19 : vector<32x256xf32>
    %cst_14 = arith.constant 0.00999999977 : f32
    %21 = vector.broadcast %cst_14 : f32 to vector<32x256xf32>
    %22 = arith.mulf %21, %18 : vector<32x256xf32>
    %23 = arith.select %20, %18, %22 : vector<32x256xi1>, vector<32x256xf32>
    %24 = arith.truncf %23 : vector<32x256xf32> to vector<32x256xbf16>
    %c0_15 = arith.constant 0 : index
    %c0_16 = arith.constant 0 : index
    %25 = vector.load %arg7[%c0_15, %c0_16] : memref<4x32xbf16, #tpu.memory_space<vmem>>, vector<4x32xbf16>
    %cst_17 = arith.constant dense<0.000000e+00> : vector<4x256xf32>
    %26 = tpu.matmul %25, %24, %cst_17 {dimension_numbers = #tpu.dot_dimension_numbers<[1], [0], [0], [1], [0, 0, 1, 1], [], []>} : vector<4x32xbf16>, vector<32x256xbf16>, vector<4x256xf32> -> vector<4x256xf32>
    %c0_18 = arith.constant 0 : index
    %c0_19 = arith.constant 0 : index
    %27 = vector.load %arg8[%c0_18, %c0_19] : memref<4x1xf32, #tpu.memory_space<vmem>>, vector<4x1xf32>
    %28 = vector.broadcast %27 : vector<4x1xf32> to vector<4x256xf32>
    %29 = arith.addf %26, %28 : vector<4x256xf32>
    %c0_20 = arith.constant 0 : index
    %c0_21 = arith.constant 0 : index
    %c0_22 = arith.constant 0 : index
    %30 = vector.load %arg9[%c0_20, %c0_21, %c0_22] : memref<1x4x256xf32, #tpu.memory_space<vmem>>, vector<1x4x256xf32>
    %31 = vector.shape_cast %30 : vector<1x4x256xf32> to vector<4x256xf32>
    %32 = vector.shape_cast %29 : vector<4x256xf32> to vector<1x4x256xf32>
    tpu.vector_store %arg9[%c0_20, %c0_21, %c0_22], %32 {strides = array<i32>} : memref<1x4x256xf32, #tpu.memory_space<vmem>>, vector<1x4x256xf32>,
    return
  }
  func.func @transform_0(%arg0: i32, %arg1: i32) -> (i32, i32, i32) {
    %c0_i32 = arith.constant 0 : i32
    %c0_i32_0 = arith.constant 0 : i32
    return %arg0, %c0_i32, %arg1 : i32, i32, i32
  }
  func.func @transform_1(%arg0: i32, %arg1: i32) -> (i32, i32) {
    %c0_i32 = arith.constant 0 : i32
    %c0_i32_0 = arith.constant 0 : i32
    %c0_i32_1 = arith.constant 0 : i32
    return %c0_i32, %c0_i32_0 : i32, i32
  }
  func.func @transform_2(%arg0: i32, %arg1: i32) -> (i32, i32) {
    %c0_i32 = arith.constant 0 : i32
    %c0_i32_0 = arith.constant 0 : i32
    %c0_i32_1 = arith.constant 0 : i32
    return %c0_i32, %c0_i32_0 : i32, i32
  }
  func.func @transform_3(%arg0: i32, %arg1: i32) -> (i32, i32) {
    %c0_i32 = arith.constant 0 : i32
    %c0_i32_0 = arith.constant 0 : i32
    %c0_i32_1 = arith.constant 0 : i32
    return %c0_i32, %c0_i32_0 : i32, i32
  }
  func.func @transform_4(%arg0: i32, %arg1: i32) -> (i32, i32) {
    %c0_i32 = arith.constant 0 : i32
    %c0_i32_0 = arith.constant 0 : i32
    %c0_i32_1 = arith.constant 0 : i32
    return %c0_i32, %c0_i32_0 : i32, i32
  }
  func.func @transform_5(%arg0: i32, %arg1: i32) -> (i32, i32) {
    %c0_i32 = arith.constant 0 : i32
    %c0_i32_0 = arith.constant 0 : i32
    %c0_i32_1 = arith.constant 0 : i32
    return %c0_i32, %c0_i32_0 : i32, i32
  }
  func.func @transform_6(%arg0: i32, %arg1: i32) -> (i32, i32) {
    %c0_i32 = arith.constant 0 : i32
    %c0_i32_0 = arith.constant 0 : i32
    %c0_i32_1 = arith.constant 0 : i32
    return %c0_i32, %c0_i32_0 : i32, i32
  }
  func.func @transform_7(%arg0: i32, %arg1: i32) -> (i32, i32, i32) {
    %c0_i32 = arith.constant 0 : i32
    %c0_i32_0 = arith.constant 0 : i32
    return %arg0, %c0_i32, %arg1 : i32, i32, i32
  }
}

</mosaic_0001>

<bundles_post_ra>
// kernel: _conv2d1x1_pallas.1
= control target key start
LH: loop header
LB: loop body
LE: loop exit
PB: predicated region body
PF: predicated region fallthrough
CT: control target
= control target key end

     0   :  { %s847_s24 = smov 0   ;;  %s849_s25 = smov 0   ;;  %s939_s0 = inlined_call_operand.vmem [shape: f32[2,4,256], index: 0, kind: input, shape index: {}]   ;;  %s940_s1 = inlined_call_operand.vmem [shape: bf16[32,4], index: 1, kind: input, shape index: {}]   ;;  %s941_s2 = inlined_call_operand.vmem [shape: f32[32,1], index: 2, kind: input, shape index: {}]   ;;  %s942_s3 = inlined_call_operand.vmem [shape: bf16[32,32], index: 3, kind: input, shape index: {}]   ;;  %s943_s4 = inlined_call_operand.vmem [shape: f32[32,1], index: 4, kind: input, shape index: {}]   ;;  %s944_s5 = inlined_call_operand.vmem [shape: bf16[4,32], index: 5, kind: input, shape index: {}]   ;;  %s945_s6 = inlined_call_operand.vmem [shape: f32[4,1], index: 6, kind: input, shape index: {}]   ;;  %s946_s7 = inlined_call_operand.vmem [shape: f32[2,4,256], index: 7, kind: output, shape index: {}]  }
   0x1   :  { %s851_s26 = smov 0  }
   0x2 LB: > { %s29_s27 = sadd.s32 1, %s800_s25  ;;  %p731_p0 = scmp.ge.s32.totalorder %s804_s26, 1  ;;  %s804_s26 = sphi %s851_s26, %s17_s26   ;;  %s800_s25 = sphi %s849_s25, %s948_s25   ;;  %s796_s24 = sphi %s847_s24, %s947_s24  }
   0x3   : > { %p31_p1 = scmp.ge.s32.totalorder %s29_s27, 2  ;;  %p258_p2 = scmp.lt.s32.totalorder %s804_s26, 3 }
   0x5   : > { %s950_s27 = smov (%p31_p1, %s29_s27), 0  ;;  %p259_p3 = pnand %p731_p0, %p258_p2 }
   0x6   : > { %p299_p4 = scmp.lt.s32.totalorder (!%p259_p3), %s796_s24, 1  ;;  %v806_v0 = vmov (!%p259_p3), 0   ;;  %v329_v1 = vld [vmem:[%s941_s2] sm:$0xff] (!%p259_p3)  ;;  %v331_v2 = vld [vmem:[%s941_s2 + $0x10] sm:$0xff] (!%p259_p3)  ;;  %v330_v3 = vld [vmem:[%s941_s2 + $0x8] sm:$0xff] (!%p259_p3)  ;;  %vm370_vm0 = vcmask (!%p259_p3), 1041408  }
   0x7   : > { %262 = sbr.rel (%p259_p3) target bundleno = 712 (0x2c8), region = 48  ;;  %409 = vmatprep.mubr.bf16.mxu0 (!%p259_p3), %v806_v0  ;;  %775 = vset.pattern.permute.xlu0 (!%p259_p3), %v806_v0  ;;  %v332_v4 = vld [vmem:[%s941_s2 + $0x18] sm:$0xff] (!%p259_p3)  ;;  %v462_v8 = vld [vmem:[%s943_s4] sm:$0xff] (!%p259_p3)  ;;  %v463_v11 = vld [vmem:[%s943_s4 + $0x8] sm:$0xff] (!%p259_p3)  ;;  %vm363_vm1 = vcmask (!%p259_p3), 31744   ;;  %vm496_vm10 = vcmask (!%p259_p3), 261120  }
   0x8   : > { %776 = vset.pattern.permute.xlu1 (!%p259_p3), %v806_v0  ;;  %535 = vmatprep.mubr.bf16.mxu1 (!%p259_p3), %v806_v0  ;;  %v778_v12 = vld [vmem:[%s940_s1] sm:$0xff] (!%p259_p3)   ;;  %v464_v13 = vld [vmem:[%s943_s4 + $0x10] sm:$0xff] (!%p259_p3)  ;;  %v465_v14 = vld [vmem:[%s943_s4 + $0x18] sm:$0xff] (!%p259_p3) }
   0x9   : > { %335 = vperm.xlu0 (!%p259_p3), %775, %v329_v1   ;;  %345 = vperm.xlu1 (!%p259_p3), %776, %v331_v2   ;;  %v585_v15 = vld [vmem:[%s945_s6] sm:$0xf] (!%p259_p3)  ;;  %v779_v16 = vld [vmem:[%s940_s1 + $0x8] sm:$0xff] (!%p259_p3)  }
   0xa   : > { %v780_v57 = vld [vmem:[%s942_s3] sm:$0xff] (!%p259_p3)   ;;  %v781_v58 = vld [vmem:[%s942_s3 + $0x8] sm:$0xff] (!%p259_p3)  }
   0xd   : > { %340 = vperm.xlu0 (!%p259_p3), %775, %v330_v3   ;;  %350 = vperm.xlu1 (!%p259_p3), %776, %v332_v4  }
   0xe   : > { %s952_s24 = smov (!%p299_p4, %s796_s24), 1 }
   0xf   : > { %s748_s9 = sshll.u32 %s952_s24, 3 }
  0x10   : > { %s306_s14 = scalar_lea.vmem %s939_s0, %s748_s9  ;;  %s316_s21 = scalar_lea.vmem %s946_s7, %s748_s9 }
  0x11   : > { %v319_v5 = vld [vmem:[%s306_s14] sm:$0xff]  ;;  %468 = vperm.xlu0 %775, %v462_v8   ;;  %473 = vperm.xlu1 %776, %v463_v11  }
  0x12   : > { %v321_v6 = vcombine.high %v319_v5, %v319_v5  ;;  %v323_v7 = vpack.c.bf16 %v319_v5, %v319_v5 }
  0x14   : > { %v324_v9 = vpack.c.bf16 %v321_v6, %v321_v6  ;;  %v372_v10 = vsel %vm370_vm0, %v323_v7, 0 }
  0x15   : > { %478 = vperm.xlu0 %775, %v464_v13   ;;  %483 = vperm.xlu1 %776, %v465_v14  }
  0x16   : > { %738 = vmatprep.subr.msk.bf16.mxu0 %vm370_vm0, %v324_v9 }
  0x17   : > { %378 = vmatpush1.bf16.msra.mxu0 %v372_v10 }
  0x19   : > { %588 = vperm.xlu0 %775, %v585_v15  }
  0x1a   : > { %739 = vmatmul.mubr.msk.bf16.vlgmr.msra.gmra.mrb[0].mxu0 %vm363_vm1, %v778_v12 }
  0x1b   : > { %419 = vmatprep.mubr.bf16.mxu0 %v806_v0 }
  0x22   : > { %740 = vmatmul.mubr.msk.bf16.gmra.mrb[4].mxu0 %vm363_vm1, %v779_v16 }
  0x23   : > { %626 = vmatprep.mubr.bf16.mxu0 %v806_v0 }
  0x88   : > { %v336_v17 = vpop.permute.xlu0 %335  ;;  %v346_v27 = vpop.permute.xlu1 %345 }
  0x8c   : > { %v341_v21 = vpop.permute.xlu0 %340  ;;  %v351_v41 = vpop.permute.xlu1 %350 }
  0x90   : > { %v469_v59 = vpop.permute.xlu0 %468  ;;  %v474_v63 = vpop.permute.xlu1 %473 }
  0x94   : > { %v479_v11 = vpop.permute.xlu0 %478 }
  0xed   : > { %v411_v18 = vpop.f32.mrb[0].mxu0 }
  0xee   : > { %v412_v19 = vadd.f32 %v411_v18, %v336_v17  ;;  %v413_v20 = vpop.f32.mrb[1].mxu0 }
  0xef   : > { %v414_v22 = vadd.f32 %v413_v20, %v336_v17  ;;  %v415_v23 = vpop.f32.mrb[2].mxu0 }
  0xf0   : > { %v438_v24 = vmul.f32 0.01, %v412_v19  ;;  %v416_v25 = vadd.f32 %v415_v23, %v341_v21  ;;  %v417_v26 = vpop.f32.mrb[3].mxu0  ;;  %vm430_vm2 = vcmp.gt.f32.partialorder %v412_v19, 0.0 }
  0xf1   : > { %v439_v28 = vmul.f32 0.01, %v414_v22  ;;  %v418_v29 = vadd.f32 %v417_v26, %v341_v21  ;;  %vm431_vm3 = vcmp.gt.f32.partialorder %v414_v22, 0.0 }
  0xf2   : > { %v440_v30 = vmul.f32 0.01, %v416_v25  ;;  %vm432_vm4 = vcmp.gt.f32.partialorder %v416_v25, 0.0  ;;  %v446_v32 = vsel %vm430_vm2, %v412_v19, %v438_v24  ;;  %v484_v19 = vpop.permute.xlu1 %483 }
  0xf3   : > { %v441_v31 = vmul.f32 0.01, %v418_v29  ;;  %vm433_vm5 = vcmp.gt.f32.partialorder %v418_v29, 0.0  ;;  %v447_v35 = vsel %vm431_vm3, %v414_v22, %v439_v28 }
  0xf4   : > { %v448_v33 = vsel %vm432_vm4, %v416_v25, %v440_v30 }
  0xf5   : > { %v421_v34 = vpop.f32.mrb[4].mxu0  ;;  %v449_v36 = vsel %vm433_vm5, %v418_v29, %v441_v31  ;;  %v454_v37 = vpack.c.bf16 %v448_v33, %v446_v32 }
  0xf6   : > { %v422_v38 = vadd.f32 %v421_v34, %v346_v27  ;;  %v423_v39 = vpop.f32.mrb[5].mxu0  ;;  %v455_v40 = vpack.c.bf16 %v449_v36, %v447_v35  ;;  %v584_v35 = vld [vmem:[%s944_s5] sm:$0x3]  ;;  %v589_v36 = vpop.permute.xlu0 %588 }
  0xf7   : > { %v424_v42 = vadd.f32 %v423_v39, %v346_v27  ;;  %v425_v43 = vpop.f32.mrb[6].mxu0 }
  0xf8   : > { %v442_v44 = vmul.f32 0.01, %v422_v38  ;;  %v426_v45 = vadd.f32 %v425_v43, %v351_v41  ;;  %v427_v46 = vpop.f32.mrb[7].mxu0  ;;  %503 = vmatprep.subr.bf16.mxu1 %v455_v40  ;;  %vm434_vm6 = vcmp.gt.f32.partialorder %v422_v38, 0.0 }
  0xf9   : > { %v443_v47 = vmul.f32 0.01, %v424_v42  ;;  %v428_v48 = vadd.f32 %v427_v46, %v351_v41  ;;  %504 = vmatpush1.bf16.msra.mxu1 %v454_v37  ;;  %vm435_vm7 = vcmp.gt.f32.partialorder %v424_v42, 0.0 }
  0xfa   : > { %vm436_vm8 = vcmp.gt.f32.partialorder %v426_v45, 0.0  ;;  %v444_v49 = vmul.f32 0.01, %v426_v45  ;;  %v450_v51 = vsel %vm434_vm6, %v422_v38, %v442_v44 }
  0xfb   : > { %vm437_vm9 = vcmp.gt.f32.partialorder %v428_v48, 0.0  ;;  %v445_v50 = vmul.f32 0.01, %v428_v48  ;;  %v451_v53 = vsel %vm435_vm7, %v424_v42, %v443_v47 }
  0xfc   : > { %v452_v52 = vsel %vm436_vm8, %v426_v45, %v444_v49 }
  0xfd   : > { %v453_v54 = vsel %vm437_vm9, %v428_v48, %v445_v50  ;;  %v456_v55 = vpack.c.bf16 %v452_v52, %v450_v51 }
  0xfe   : > { %v457_v56 = vpack.c.bf16 %v453_v54, %v451_v53 }
 0x100   : > { %505 = vmatprep.subr.bf16.mxu1 %v457_v56 }
 0x101   : > { %506 = vmatpush1.bf16.msra.mxu1 %v456_v55 }
 0x104   : > { %743 = vmatmul.mubr.msk.bf16.vlgmr.msra.gmra.mrb[0].mxu1 %vm496_vm10, %v780_v57 }
 0x105   : > { %545 = vmatprep.mubr.bf16.mxu1 %v806_v0 }
 0x10c   : > { %744 = vmatmul.mubr.msk.bf16.gmra.mrb[4].mxu1 %vm496_vm10, %v781_v58 }
 0x1d7   : > { %v537_v60 = vpop.f32.mrb[0].mxu1 }
 0x1d8   : > { %v538_v61 = vadd.f32 %v537_v60, %v469_v59  ;;  %v539_v62 = vpop.f32.mrb[1].mxu1 }
 0x1d9   : > { %v540_v1 = vadd.f32 %v539_v62, %v469_v59  ;;  %v541_v2 = vpop.f32.mrb[2].mxu1 }
 0x1da   : > { %v564_v3 = vmul.f32 0.01, %v538_v61  ;;  %v542_v4 = vadd.f32 %v541_v2, %v474_v63  ;;  %v543_v5 = vpop.f32.mrb[3].mxu1  ;;  %vm556_vm11 = vcmp.gt.f32.partialorder %v538_v61, 0.0 }
 0x1db   : > { %v565_v6 = vmul.f32 0.01, %v540_v1  ;;  %v544_v7 = vadd.f32 %v543_v5, %v474_v63  ;;  %vm557_vm12 = vcmp.gt.f32.partialorder %v540_v1, 0.0 }
 0x1dc   : > { %vm558_vm13 = vcmp.gt.f32.partialorder %v542_v4, 0.0  ;;  %v566_v0 = vmul.f32 0.01, %v542_v4  ;;  %v572_v9 = vsel %vm556_vm11, %v538_v61, %v564_v3 }
 0x1dd   : > { %vm559_vm14 = vcmp.gt.f32.partialorder %v544_v7, 0.0  ;;  %v567_v8 = vmul.f32 0.01, %v544_v7  ;;  %v573_v14 = vsel %vm557_vm12, %v540_v1, %v565_v6 }
 0x1de   : > { %v574_v10 = vsel %vm558_vm13, %v542_v4, %v566_v0 }
 0x1df   : > { %v580_v12 = vpack.c.bf16 %v574_v10, %v572_v9  ;;  %v547_v13 = vpop.f32.mrb[4].mxu1  ;;  %v575_v15 = vsel %vm559_vm14, %v544_v7, %v567_v8 }
 0x1e0   : > { %v548_v16 = vadd.f32 %v547_v13, %v479_v11  ;;  %v549_v17 = vpop.f32.mrb[5].mxu1  ;;  %v581_v18 = vpack.c.bf16 %v575_v15, %v573_v14 }
 0x1e1   : > { %v550_v20 = vadd.f32 %v549_v17, %v479_v11  ;;  %v551_v21 = vpop.f32.mrb[6].mxu1 }
 0x1e2   : > { %v568_v22 = vmul.f32 0.01, %v548_v16  ;;  %v552_v23 = vadd.f32 %v551_v21, %v484_v19  ;;  %v553_v24 = vpop.f32.mrb[7].mxu1  ;;  %594 = vmatprep.subr.bf16.mxu0 %v581_v18  ;;  %vm560_vm15 = vcmp.gt.f32.partialorder %v548_v16, 0.0 }
 0x1e3   : > { %v569_v25 = vmul.f32 0.01, %v550_v20  ;;  %v554_v26 = vadd.f32 %v553_v24, %v484_v19  ;;  %595 = vmatpush1.bf16.msra.mxu0 %v580_v12  ;;  %vm561_vm0 = vcmp.gt.f32.partialorder %v550_v20, 0.0 }
 0x1e4   : > { %vm562_vm1 = vcmp.gt.f32.partialorder %v552_v23, 0.0  ;;  %v570_v27 = vmul.f32 0.01, %v552_v23  ;;  %v576_v29 = vsel %vm560_vm15, %v548_v16, %v568_v22 }
 0x1e5   : > { %vm563_vm2 = vcmp.gt.f32.partialorder %v554_v26, 0.0  ;;  %v571_v28 = vmul.f32 0.01, %v554_v26  ;;  %v577_v32 = vsel %vm561_vm0, %v550_v20, %v569_v25 }
 0x1e6   : > { %v578_v30 = vsel %vm562_vm1, %v552_v23, %v570_v27 }
 0x1e7   : > { %v582_v31 = vpack.c.bf16 %v578_v30, %v576_v29  ;;  %v579_v33 = vsel %vm563_vm2, %v554_v26, %v571_v28 }
 0x1e8   : > { %v583_v34 = vpack.c.bf16 %v579_v33, %v577_v32 }
 0x1ea   : > { %596 = vmatprep.subr.bf16.mxu0 %v583_v34 }
 0x1eb   : > { %597 = vmatpush1.bf16.msra.mxu0 %v582_v31 }
 0x1ee   : > { %745 = vmatmul.mubr.msk.bf16.vlgmr.msra.gmra.mrb[8].mxu0 %vm496_vm10, %v584_v35 }
 0x2c1   : > { %v628_v37 = vpop.f32.mrb[8].mxu0 }
 0x2c2   : > { %v629_v38 = vadd.f32 %v628_v37, %v589_v36  ;;  %v630_v39 = vpop.f32.mrb[9].mxu0 }
 0x2c3   : > { %v631_v40 = vadd.f32 %v630_v39, %v589_v36  ;;  %v632_v41 = vpop.f32.mrb[10].mxu0 }
 0x2c4   : > { %v633_v42 = vpop.f32.mrb[11].mxu0 }
 0x2c5   : > { %v637_v43 = vcombine.low %v629_v38, %v631_v40 }
 0x2c7   : > { %639 = vst [vmem:[%s316_s21] sm:$0xff] %v637_v43 }
 0x2c8 PF: > { %s17_s26 = sadd.s32 1, %s804_s26   ;;  %s947_s24 = smov %s800_s25 }
 0x2c9   : > { %p14_p5 = scmp.ge.s32.totalorder %s17_s26, 4   ;;  %s948_s25 = smov %s950_s27 }
 0x2cb   :  { %16 = sbr.rel (!%p14_p5) target bundleno = 2 (0x2), region = 78 }

</bundles_post_ra>
